<compile_context>
chip_gen: v7x
topology: tpu7x:2x2x1
jax: 0.10.0
libtpu: 0.0.40
codegen_flags: <defaults>
</compile_context>

<pallas_src>
import functools

import jax
import jax.numpy as jnp
from jax.experimental import pallas as pl
from jax.experimental.pallas import tpu as pltpu

_LANE = 128
_GRANULE = 16            # bf16 sublane packing is (16, 128)


def _cdiv(a, b):
    return -(-a // b)


def _round_up(v, m):
    return _cdiv(v, m) * m


# ----------------------------------------------------------------------------
# Kernel
# ----------------------------------------------------------------------------
def _sigmoid(x, eup_dtype):
    # sigmoid(x) == 0.5*(tanh(0.5*x)+1): tanh lands in the EUP slot instead of
    # a multi-op VALU Newton divide.  On v6e/v7x the EUP runs bf16 at ~2x the
    # f32 rate, so the tanh operand is cast to `eup_dtype` there (f32 on v5e,
    # which has no bf16 EUP).
    t = jnp.tanh((0.5 * x).astype(eup_dtype))
    return 0.5 * (t + 1.0)      # stays in eup_dtype (weakly-typed scalars)


def rnn2_kernel(x_ref, s_ref,
                w1_ref, b1_ref, w2_ref, b2_ref, w3_ref, b3_ref, w4_ref, b4_ref,
                w5h_ref, w5s_ref, b5_ref, w6_ref, b6_ref,
                o_ref, *, eup_dtype):
    mm_dtype = w1_ref.dtype                            # bf16 matmul operands

    # x streams in at its source dtype (no wrapper-side pad/cast HBM pass);
    # cast to the MXU operand dtype in-register.
    x = x_ref[...].astype(mm_dtype)                    # (TB, inputsize)

    # fc1: four (Linear -> Sigmoid) stages, MXU matmuls with f32 accumulation.
    h = _sigmoid(jnp.dot(x, w1_ref[...], preferred_element_type=jnp.float32)
                 + b1_ref[...], eup_dtype)
    h = _sigmoid(jnp.dot(h.astype(mm_dtype), w2_ref[...],
                         preferred_element_type=jnp.float32) + b2_ref[...],
                 eup_dtype)
    h = _sigmoid(jnp.dot(h.astype(mm_dtype), w3_ref[...],
                         preferred_element_type=jnp.float32) + b3_ref[...],
                 eup_dtype)
    h = _sigmoid(jnp.dot(h.astype(mm_dtype), w4_ref[...],
                         preferred_element_type=jnp.float32) + b4_ref[...],
                 eup_dtype)                            # (TB, 64)

    # dropout(p=0.2): identity in eval mode.

    # cat([h, state], 1) @ W5 == h @ W5[:64] + state * W5[64, :] (statesize==1)
    # so the degenerate K=1 matmul becomes a VPU broadcast multiply.
    s = s_ref[...]                                     # (TB, 1) f32
    z = (jnp.dot(h.astype(mm_dtype), w5h_ref[...],
                 preferred_element_type=jnp.float32)
         + s * w5s_ref[...]
         + b5_ref[...])
    z = _sigmoid(z, eup_dtype).astype(jnp.float32)     # (TB, 32) f32

    # Final Linear(32, 1): VPU multiply + lane reduction (no N=1 MXU pass).
    out = jnp.sum(z * w6_ref[...], axis=-1, keepdims=True) + b6_ref[...]
    o_ref[...] = out.astype(o_ref.dtype)               # (TB, 1)


# ----------------------------------------------------------------------------
# Tiling / VMEM budgeting helpers
# ----------------------------------------------------------------------------
def _tpu_generation():
    """Returns (device_kind_lowercase, vmem_capacity_bytes)."""
    kind = ""
    try:
        kind = jax.devices()[0].device_kind.lower()
    except Exception:
        pass
    cap = None
    try:
        cap = getattr(pltpu.get_tpu_info(), "vmem_capacity_bytes", None)
    except Exception:
        cap = None
    if not cap:
        cap = (64 << 20) if "v7" in kind else (128 << 20)
    return kind, int(cap)


def _pad_lane(n):
    return _round_up(max(int(n), 1), _LANE)


def _pad_sub(n, itemsize):
    packing = max(1, 4 // max(int(itemsize), 1))
    return _round_up(max(int(n), 1), 8 * packing)


def _tile_bytes(shape, dtype):
    # VMEM footprint of one tile: last dim lane-padded to 128, second-to-last
    # sublane-padded (accounting for sub-32-bit packing).
    itemsize = jnp.dtype(dtype).itemsize
    if len(shape) == 1:
        return _pad_lane(shape[0]) * 4
    lead = 1
    for d in shape[:-2]:
        lead *= int(d)
    return lead * _pad_sub(shape[-2], itemsize) * _pad_lane(shape[-1]) * itemsize


def _vmem_estimate(tb, in_features, x_dtype, weights):
    # Double-buffered streaming tiles: x, state (lane-padded (tb,1)), output.
    stream = 2 * (_tile_bytes((tb, in_features), x_dtype)
                  + _tile_bytes((tb, 1), jnp.float32)
                  + _tile_bytes((tb, 1), jnp.float32))
    # Weights use blocked specs with constant index maps -> double-buffered
    # (they are never re-DMA'd, but two buffers are allocated).
    wbytes = 2 * sum(_tile_bytes(w.shape, w.dtype) for w in weights)
    # Live f32 intermediates h1..h4/z plus their bf16 matmul-operand copies.
    feat = sum(_pad_lane(n) for n in (224, 256, 128, 64, 32))
    interm = tb * feat * 4 * 3 // 2
    return stream + wbytes + interm


def _choose_tile(B, block_b, kind, vmem_budget, in_features, x_dtype, weights):
    gen_cap = 4096 if "v7" in kind else 8192         # 64 MiB vs 128 MiB VMEM
    tb = max(_GRANULE, min(_round_up(block_b, _GRANULE), gen_cap,
                           _round_up(B, _GRANULE)))
    # Shrink the tile until the estimated working set fits this generation.
    while tb > _GRANULE and _vmem_estimate(tb, in_features, x_dtype,
                                           weights) > vmem_budget:
        tb = max(_GRANULE, (tb // 2) // _GRANULE * _GRANULE)
    # Prefer an even block count (>= 2 when the batch allows) so the two v7x
    # TensorCores stay balanced; >= 2 blocks also lets DMA overlap compute.
    n = _cdiv(B, tb)
    if n > 1 and n % 2 == 1:
        tb_alt = _round_up(_cdiv(B, n + 1), _GRANULE)
        if tb_alt >= _GRANULE and _cdiv(B, tb_alt) % 2 == 0:
            tb = tb_alt
    elif n == 1 and B > 2 * _GRANULE:
        tb_alt = _round_up(_cdiv(B, 2), _GRANULE)
        if _cdiv(B, tb_alt) == 2:
            tb = tb_alt
    # A block covering the whole batch may simply equal it (a full-dim block
    # is exempt from the sublane-multiple requirement).
    return min(tb, B)


# ----------------------------------------------------------------------------
# Wrapper
# ----------------------------------------------------------------------------
def rnn2_forward(x, state, params, *, block_b=2048, compute_dtype=jnp.bfloat16,
                 eup_dtype=None):
    """x: (B, C, H, W) float; state: (B,) or (B, 1)."""
    B = x.shape[0]
    x2d = x.reshape(B, -1)                     # metadata-only; no extra HBM pass
    in_features = x2d.shape[1]
    s2d = state.reshape(B, 1).astype(jnp.float32)

    (w1, b1, w2, b2, w3, b3, w4, b4, w5, b5, w6, b6) = params
    h_dim = w4.shape[1]                        # 64
    statesize = w5.shape[0] - h_dim
    assert statesize == 1, "forward() reshapes state to (B, 1); statesize must be 1"

    kind, vmem_cap = _tpu_generation()
    if eup_dtype is None:
        # bf16 EUP exists on v6e/v7x only; keep f32 tanh elsewhere (v5e etc.).
        eup_dtype = jnp.bfloat16 if ("v6" in kind or "v7" in kind) else jnp.float32

    # Weights are (in_features, out_features): every layer is y = x @ W + b.
    w5h = w5[:h_dim, :]                        # (64, 32) -> MXU
    w5s = w5[h_dim:, :].reshape(1, -1)         # (1, 32)  -> VPU row
    w6r = w6.reshape(1, -1)                    # (1, 32)  -> VPU row
    weights = (w1.astype(compute_dtype), b1.reshape(1, -1).astype(jnp.float32),
               w2.astype(compute_dtype), b2.reshape(1, -1).astype(jnp.float32),
               w3.astype(compute_dtype), b3.reshape(1, -1).astype(jnp.float32),
               w4.astype(compute_dtype), b4.reshape(1, -1).astype(jnp.float32),
               w5h.astype(compute_dtype), w5s.astype(jnp.float32),
               b5.reshape(1, -1).astype(jnp.float32),
               w6r.astype(jnp.float32), b6.reshape(1, -1).astype(jnp.float32))

    vmem_budget = int(vmem_cap * 0.8)
    tb = _choose_tile(B, block_b, kind, vmem_budget, in_features, x2d.dtype,
                      weights)
    n_blocks = _cdiv(B, tb)

    # x/state/out stream over the batch grid.  The final block may be partial:
    # rows >= B hold garbage-but-finite data, every op is row-independent and
    # those rows are never written back.  Weights keep a constant block index
    # so they stay VMEM-resident across grid steps (no re-DMA).
    x_spec = pl.BlockSpec((tb, in_features), lambda i: (i, 0))
    s_spec = pl.BlockSpec((tb, 1), lambda i: (i, 0))
    w_specs = [pl.BlockSpec(tuple(w.shape), lambda i: (0, 0)) for w in weights]
    o_spec = pl.BlockSpec((tb, 1), lambda i: (i, 0))

    vmem_limit = max(32 << 20,
                     _vmem_estimate(tb, in_features, x2d.dtype, weights)
                     + (8 << 20))
    vmem_limit = min(vmem_limit, int(vmem_cap * 0.85))

    weight_bytes = sum(int(w.size) * w.dtype.itemsize for w in weights)
    flops = 2 * B * sum(int(w.shape[0]) * int(w.shape[1])
                        for w in (w1, w2, w3, w4, w5, w6))
    transcendentals = B * sum(int(w.shape[1]) for w in (w1, w2, w3, w4, w5))
    bytes_accessed = (int(x2d.size) * x2d.dtype.itemsize + 2 * B * 4
                      + weight_bytes)

    out = pl.pallas_call(
        functools.partial(rnn2_kernel, eup_dtype=eup_dtype),
        out_shape=jax.ShapeDtypeStruct((B, 1), jnp.float32),
        grid=(n_blocks,),
        in_specs=[x_spec, s_spec] + w_specs,
        out_specs=o_spec,
        compiler_params=pltpu.CompilerParams(
            dimension_semantics=("parallel",),     # megacore split on v7x
            vmem_limit_bytes=vmem_limit),
        cost_estimate=pl.CostEstimate(flops=flops,
                                      transcendentals=transcendentals,
                                      bytes_accessed=bytes_accessed),
    )(x2d, s2d, *weights)
    return out


# ----------------------------------------------------------------------------
# Reference + params
# ----------------------------------------------------------------------------
def init_params(key, inputsize, statesize=1):
    layer1 = [224, 256, 128, 64]
    layer2 = [32]
    dims = [(inputsize, layer1[0]), (layer1[0], layer1[1]),
            (layer1[1], layer1[2]), (layer1[2], layer1[3]),
            (layer1[3] + statesize, layer2[0]), (layer2[0], 1)]
    params = []
    for din, dout in dims:
        key, kw, kb = jax.random.split(key, 3)
        bound = 1.0 / float(din) ** 0.5
        w = jax.random.uniform(kw, (din, dout), jnp.float32, -bound, bound)
        b = jax.random.uniform(kb, (dout,), jnp.float32, -bound, bound)
        params.extend([w, b])
    return tuple(params)


def rnn2_reference(x, state, params, compute_dtype=None):
    """Pure-JAX reference. compute_dtype=bf16 mirrors the kernel's matmul dtypes."""
    B = x.shape[0]
    h = x.reshape(B, -1).astype(jnp.float32)
    (w1, b1, w2, b2, w3, b3, w4, b4, w5, b5, w6, b6) = params

    def dot(a, w):
        if compute_dtype is not None:
            a = a.astype(compute_dtype)
            w = w.astype(compute_dtype)
        return jnp.dot(a, w, preferred_element_type=jnp.float32)

    for w, b in ((w1, b1), (w2, b2), (w3, b3), (w4, b4)):
        h = jax.nn.sigmoid(dot(h, w) + b)
    h = jnp.concatenate([h, state.reshape(B, 1).astype(jnp.float32)], axis=1)
    h = jax.nn.sigmoid(dot(h, w5) + b5)
    return dot(h, w6) + b6


if __name__ == "__main__":
    key = jax.random.PRNGKey(0)
    B, C, H, W = 2, 4, 16, 16
    inputsize = C * H * W        # 1024
    statesize = 1                # forward reshapes state to (B, 1)

    kx, ks, kp = jax.random.split(key, 3)
    x = jax.random.normal(kx, (B, C, H, W), jnp.float32)
    state = jax.random.normal(ks, (B,), jnp.float32)
    params = init_params(kp, inputsize, statesize)

    out = jax.block_until_ready(rnn2_forward(x, state, params))
    assert out.shape == (B, 1)
    ref_bf16 = rnn2_reference(x, state, params, compute_dtype=jnp.bfloat16)
    ref_f32 = rnn2_reference(x, state, params)
    assert jnp.allclose(out, ref_bf16, atol=2e-2, rtol=2e-2)
    assert jnp.allclose(out, ref_f32, atol=4e-2, rtol=4e-2)

    # Ragged batch: exercises the multi-block grid, even block-count split and
    # the partial (unpadded) final block path.
    B2 = 300
    kx2, ks2 = jax.random.split(kx)
    x2 = jax.random.normal(kx2, (B2, C, H, W), jnp.float32)
    state2 = jax.random.normal(ks2, (B2,), jnp.float32)
    out2 = jax.block_until_ready(rnn2_forward(x2, state2, params))
    assert out2.shape == (B2, 1)
    ref2 = rnn2_reference(x2, state2, params, compute_dtype=jnp.bfloat16)
    assert jnp.allclose(out2, ref2, atol=2e-2, rtol=2e-2)

    print("KERNEL_OK")
</pallas_src>

<mosaic_0001>
module attributes {stable_mosaic.version = 11 : i64} {
  func.func @rnn2_kernel(%arg0: i32, %arg1: memref<2x1024xf32, #tpu.memory_space<vmem>>, %arg2: memref<2x1xf32, #tpu.memory_space<vmem>>, %arg3: memref<1024x224xbf16, #tpu.memory_space<vmem>>, %arg4: memref<1x224xf32, #tpu.memory_space<vmem>>, %arg5: memref<224x256xbf16, #tpu.memory_space<vmem>>, %arg6: memref<1x256xf32, #tpu.memory_space<vmem>>, %arg7: memref<256x128xbf16, #tpu.memory_space<vmem>>, %arg8: memref<1x128xf32, #tpu.memory_space<vmem>>, %arg9: memref<128x64xbf16, #tpu.memory_space<vmem>>, %arg10: memref<1x64xf32, #tpu.memory_space<vmem>>, %arg11: memref<64x32xbf16, #tpu.memory_space<vmem>>, %arg12: memref<1x32xf32, #tpu.memory_space<vmem>>, %arg13: memref<1x32xf32, #tpu.memory_space<vmem>>, %arg14: memref<1x32xf32, #tpu.memory_space<vmem>>, %arg15: memref<1x1xf32, #tpu.memory_space<vmem>>, %arg16: memref<2x1xf32, #tpu.memory_space<vmem>>) attributes {dimension_semantics = [#tpu.dimension_semantics<parallel>], iteration_bounds = array<i64: 1>, scalar_prefetch = 0 : i64, scratch_operands = 0 : i64, tpu.core_type = #tpu.core_type<tc>, window_params = [{transform_indices = @transform_0, window_bounds = array<i64: 2, 1024>}, {transform_indices = @transform_1, window_bounds = array<i64: 2, 1>}, {pipeline_mode = #tpu.pipeline_mode<synchronous>, transform_indices = @transform_2, window_bounds = array<i64: 1024, 224>}, {pipeline_mode = #tpu.pipeline_mode<synchronous>, transform_indices = @transform_3, window_bounds = array<i64: 1, 224>}, {pipeline_mode = #tpu.pipeline_mode<synchronous>, transform_indices = @transform_4, window_bounds = array<i64: 224, 256>}, {pipeline_mode = #tpu.pipeline_mode<synchronous>, transform_indices = @transform_5, window_bounds = array<i64: 1, 256>}, {pipeline_mode = #tpu.pipeline_mode<synchronous>, transform_indices = @transform_6, window_bounds = array<i64: 256, 128>}, {pipeline_mode = #tpu.pipeline_mode<synchronous>, transform_indices = @transform_7, window_bounds = array<i64: 1, 128>}, {pipeline_mode = #tpu.pipeline_mode<synchronous>, transform_indices = @transform_8, window_bounds = array<i64: 128, 64>}, {pipeline_mode = #tpu.pipeline_mode<synchronous>, transform_indices = @transform_9, window_bounds = array<i64: 1, 64>}, {pipeline_mode = #tpu.pipeline_mode<synchronous>, transform_indices = @transform_10, window_bounds = array<i64: 64, 32>}, {pipeline_mode = #tpu.pipeline_mode<synchronous>, transform_indices = @transform_11, window_bounds = array<i64: 1, 32>}, {pipeline_mode = #tpu.pipeline_mode<synchronous>, transform_indices = @transform_12, window_bounds = array<i64: 1, 32>}, {pipeline_mode = #tpu.pipeline_mode<synchronous>, transform_indices = @transform_13, window_bounds = array<i64: 1, 32>}, {pipeline_mode = #tpu.pipeline_mode<synchronous>, transform_indices = @transform_14, window_bounds = array<i64: 1, 1>}, {transform_indices = @transform_15, window_bounds = array<i64: 2, 1>}]} {
    %c0 = arith.constant 0 : index
    %c0_0 = arith.constant 0 : index
    %0 = vector.load %arg1[%c0, %c0_0] : memref<2x1024xf32, #tpu.memory_space<vmem>>, vector<2x1024xf32>
    %1 = arith.truncf %0 : vector<2x1024xf32> to vector<2x1024xbf16>
    %c0_1 = arith.constant 0 : index
    %c0_2 = arith.constant 0 : index
    %2 = vector.load %arg3[%c0_1, %c0_2] : memref<1024x224xbf16, #tpu.memory_space<vmem>>, vector<1024x224xbf16>
    %cst = arith.constant dense<0.000000e+00> : vector<2x224xf32>
    %3 = tpu.matmul %1, %2, %cst {dimension_numbers = #tpu.dot_dimension_numbers<[1], [0], [0], [1], [0, 0, 1, 1], [], []>} : vector<2x1024xbf16>, vector<1024x224xbf16>, vector<2x224xf32> -> vector<2x224xf32>
    %c0_3 = arith.constant 0 : index
    %c0_4 = arith.constant 0 : index
    %4 = vector.load %arg4[%c0_3, %c0_4] : memref<1x224xf32, #tpu.memory_space<vmem>>, vector<1x224xf32>
    %5 = vector.broadcast %4 : vector<1x224xf32> to vector<2x224xf32>
    %6 = arith.addf %3, %5 : vector<2x224xf32>
    %cst_5 = arith.constant 5.000000e-01 : f32
    %7 = vector.broadcast %cst_5 : f32 to vector<2x224xf32>
    %8 = arith.mulf %7, %6 : vector<2x224xf32>
    %9 = math.tanh %8 : vector<2x224xf32>
    %cst_6 = arith.constant 1.000000e+00 : f32
    %10 = vector.broadcast %cst_6 : f32 to vector<2x224xf32>
    %11 = arith.addf %9, %10 : vector<2x224xf32>
    %cst_7 = arith.constant 5.000000e-01 : f32
    %12 = vector.broadcast %cst_7 : f32 to vector<2x224xf32>
    %13 = arith.mulf %12, %11 : vector<2x224xf32>
    %14 = arith.truncf %13 : vector<2x224xf32> to vector<2x224xbf16>
    %c0_8 = arith.constant 0 : index
    %c0_9 = arith.constant 0 : index
    %15 = vector.load %arg5[%c0_8, %c0_9] : memref<224x256xbf16, #tpu.memory_space<vmem>>, vector<224x256xbf16>
    %cst_10 = arith.constant dense<0.000000e+00> : vector<2x256xf32>
    %16 = tpu.matmul %14, %15, %cst_10 {dimension_numbers = #tpu.dot_dimension_numbers<[1], [0], [0], [1], [0, 0, 1, 1], [], []>} : vector<2x224xbf16>, vector<224x256xbf16>, vector<2x256xf32> -> vector<2x256xf32>
    %c0_11 = arith.constant 0 : index
    %c0_12 = arith.constant 0 : index
    %17 = vector.load %arg6[%c0_11, %c0_12] : memref<1x256xf32, #tpu.memory_space<vmem>>, vector<1x256xf32>
    %18 = vector.broadcast %17 : vector<1x256xf32> to vector<2x256xf32>
    %19 = arith.addf %16, %18 : vector<2x256xf32>
    %cst_13 = arith.constant 5.000000e-01 : f32
    %20 = vector.broadcast %cst_13 : f32 to vector<2x256xf32>
    %21 = arith.mulf %20, %19 : vector<2x256xf32>
    %22 = math.tanh %21 : vector<2x256xf32>
    %cst_14 = arith.constant 1.000000e+00 : f32
    %23 = vector.broadcast %cst_14 : f32 to vector<2x256xf32>
    %24 = arith.addf %22, %23 : vector<2x256xf32>
    %cst_15 = arith.constant 5.000000e-01 : f32
    %25 = vector.broadcast %cst_15 : f32 to vector<2x256xf32>
    %26 = arith.mulf %25, %24 : vector<2x256xf32>
    %27 = arith.truncf %26 : vector<2x256xf32> to vector<2x256xbf16>
    %c0_16 = arith.constant 0 : index
    %c0_17 = arith.constant 0 : index
    %28 = vector.load %arg7[%c0_16, %c0_17] : memref<256x128xbf16, #tpu.memory_space<vmem>>, vector<256x128xbf16>
    %cst_18 = arith.constant dense<0.000000e+00> : vector<2x128xf32>
    %29 = tpu.matmul %27, %28, %cst_18 {dimension_numbers = #tpu.dot_dimension_numbers<[1], [0], [0], [1], [0, 0, 1, 1], [], []>} : vector<2x256xbf16>, vector<256x128xbf16>, vector<2x128xf32> -> vector<2x128xf32>
    %c0_19 = arith.constant 0 : index
    %c0_20 = arith.constant 0 : index
    %30 = vector.load %arg8[%c0_19, %c0_20] : memref<1x128xf32, #tpu.memory_space<vmem>>, vector<1x128xf32>
    %31 = vector.broadcast %30 : vector<1x128xf32> to vector<2x128xf32>
    %32 = arith.addf %29, %31 : vector<2x128xf32>
    %cst_21 = arith.constant 5.000000e-01 : f32
    %33 = vector.broadcast %cst_21 : f32 to vector<2x128xf32>
    %34 = arith.mulf %33, %32 : vector<2x128xf32>
    %35 = math.tanh %34 : vector<2x128xf32>
    %cst_22 = arith.constant 1.000000e+00 : f32
    %36 = vector.broadcast %cst_22 : f32 to vector<2x128xf32>
    %37 = arith.addf %35, %36 : vector<2x128xf32>
    %cst_23 = arith.constant 5.000000e-01 : f32
    %38 = vector.broadcast %cst_23 : f32 to vector<2x128xf32>
    %39 = arith.mulf %38, %37 : vector<2x128xf32>
    %40 = arith.truncf %39 : vector<2x128xf32> to vector<2x128xbf16>
    %c0_24 = arith.constant 0 : index
    %c0_25 = arith.constant 0 : index
    %41 = vector.load %arg9[%c0_24, %c0_25] : memref<128x64xbf16, #tpu.memory_space<vmem>>, vector<128x64xbf16>
    %cst_26 = arith.constant dense<0.000000e+00> : vector<2x64xf32>
    %42 = tpu.matmul %40, %41, %cst_26 {dimension_numbers = #tpu.dot_dimension_numbers<[1], [0], [0], [1], [0, 0, 1, 1], [], []>} : vector<2x128xbf16>, vector<128x64xbf16>, vector<2x64xf32> -> vector<2x64xf32>
    %c0_27 = arith.constant 0 : index
    %c0_28 = arith.constant 0 : index
    %43 = vector.load %arg10[%c0_27, %c0_28] : memref<1x64xf32, #tpu.memory_space<vmem>>, vector<1x64xf32>
    %44 = vector.broadcast %43 : vector<1x64xf32> to vector<2x64xf32>
    %45 = arith.addf %42, %44 : vector<2x64xf32>
    %cst_29 = arith.constant 5.000000e-01 : f32
    %46 = vector.broadcast %cst_29 : f32 to vector<2x64xf32>
    %47 = arith.mulf %46, %45 : vector<2x64xf32>
    %48 = math.tanh %47 : vector<2x64xf32>
    %cst_30 = arith.constant 1.000000e+00 : f32
    %49 = vector.broadcast %cst_30 : f32 to vector<2x64xf32>
    %50 = arith.addf %48, %49 : vector<2x64xf32>
    %cst_31 = arith.constant 5.000000e-01 : f32
    %51 = vector.broadcast %cst_31 : f32 to vector<2x64xf32>
    %52 = arith.mulf %51, %50 : vector<2x64xf32>
    %c0_32 = arith.constant 0 : index
    %c0_33 = arith.constant 0 : index
    %53 = vector.load %arg2[%c0_32, %c0_33] : memref<2x1xf32, #tpu.memory_space<vmem>>, vector<2x1xf32>
    %54 = arith.truncf %52 : vector<2x64xf32> to vector<2x64xbf16>
    %c0_34 = arith.constant 0 : index
    %c0_35 = arith.constant 0 : index
    %55 = vector.load %arg11[%c0_34, %c0_35] : memref<64x32xbf16, #tpu.memory_space<vmem>>, vector<64x32xbf16>
    %cst_36 = arith.constant dense<0.000000e+00> : vector<2x32xf32>
    %56 = tpu.matmul %54, %55, %cst_36 {dimension_numbers = #tpu.dot_dimension_numbers<[1], [0], [0], [1], [0, 0, 1, 1], [], []>} : vector<2x64xbf16>, vector<64x32xbf16>, vector<2x32xf32> -> vector<2x32xf32>
    %c0_37 = arith.constant 0 : index
    %c0_38 = arith.constant 0 : index
    %57 = vector.load %arg12[%c0_37, %c0_38] : memref<1x32xf32, #tpu.memory_space<vmem>>, vector<1x32xf32>
    %58 = vector.broadcast %53 : vector<2x1xf32> to vector<2x32xf32>
    %59 = vector.broadcast %57 : vector<1x32xf32> to vector<2x32xf32>
    %60 = arith.mulf %58, %59 : vector<2x32xf32>
    %61 = arith.addf %56, %60 : vector<2x32xf32>
    %c0_39 = arith.constant 0 : index
    %c0_40 = arith.constant 0 : index
    %62 = vector.load %arg13[%c0_39, %c0_40] : memref<1x32xf32, #tpu.memory_space<vmem>>, vector<1x32xf32>
    %63 = vector.broadcast %62 : vector<1x32xf32> to vector<2x32xf32>
    %64 = arith.addf %61, %63 : vector<2x32xf32>
    %cst_41 = arith.constant 5.000000e-01 : f32
    %65 = vector.broadcast %cst_41 : f32 to vector<2x32xf32>
    %66 = arith.mulf %65, %64 : vector<2x32xf32>
    %67 = math.tanh %66 : vector<2x32xf32>
    %cst_42 = arith.constant 1.000000e+00 : f32
    %68 = vector.broadcast %cst_42 : f32 to vector<2x32xf32>
    %69 = arith.addf %67, %68 : vector<2x32xf32>
    %cst_43 = arith.constant 5.000000e-01 : f32
    %70 = vector.broadcast %cst_43 : f32 to vector<2x32xf32>
    %71 = arith.mulf %70, %69 : vector<2x32xf32>
    %c0_44 = arith.constant 0 : index
    %c0_45 = arith.constant 0 : index
    %72 = vector.load %arg14[%c0_44, %c0_45] : memref<1x32xf32, #tpu.memory_space<vmem>>, vector<1x32xf32>
    %73 = vector.broadcast %72 : vector<1x32xf32> to vector<2x32xf32>
    %74 = arith.mulf %71, %73 : vector<2x32xf32>
    %cst_46 = arith.constant dense<0.000000e+00> : vector<2xf32>
    %75 = vector.multi_reduction <add>, %74, %cst_46 [1] : vector<2x32xf32> to vector<2xf32>
    %76 = vector.shape_cast %75 : vector<2xf32> to vector<2x1xf32>
    %c0_47 = arith.constant 0 : index
    %c0_48 = arith.constant 0 : index
    %77 = vector.load %arg15[%c0_47, %c0_48] : memref<1x1xf32, #tpu.memory_space<vmem>>, vector<1x1xf32>
    %78 = vector.broadcast %77 : vector<1x1xf32> to vector<2x1xf32>
    %79 = arith.addf %76, %78 : vector<2x1xf32>
    %c0_49 = arith.constant 0 : index
    %c0_50 = arith.constant 0 : index
    %80 = vector.load %arg16[%c0_49, %c0_50] : memref<2x1xf32, #tpu.memory_space<vmem>>, vector<2x1xf32>
    tpu.vector_store %arg16[%c0_49, %c0_50], %79 {strides = array<i32>} : memref<2x1xf32, #tpu.memory_space<vmem>>, vector<2x1xf32>,
    return
  }
  func.func @transform_0(%arg0: i32) -> (i32, i32) {
    %c0_i32 = arith.constant 0 : i32
    %c0_i32_0 = arith.constant 0 : i32
    return %arg0, %c0_i32 : i32, i32
  }
  func.func @transform_1(%arg0: i32) -> (i32, i32) {
    %c0_i32 = arith.constant 0 : i32
    %c0_i32_0 = arith.constant 0 : i32
    return %arg0, %c0_i32 : i32, i32
  }
  func.func @transform_2(%arg0: i32) -> (i32, i32) {
    %c0_i32 = arith.constant 0 : i32
    %c0_i32_0 = arith.constant 0 : i32
    %c0_i32_1 = arith.constant 0 : i32
    return %c0_i32, %c0_i32_0 : i32, i32
  }
  func.func @transform_3(%arg0: i32) -> (i32, i32) {
    %c0_i32 = arith.constant 0 : i32
    %c0_i32_0 = arith.constant 0 : i32
    %c0_i32_1 = arith.constant 0 : i32
    return %c0_i32, %c0_i32_0 : i32, i32
  }
  func.func @transform_4(%arg0: i32) -> (i32, i32) {
    %c0_i32 = arith.constant 0 : i32
    %c0_i32_0 = arith.constant 0 : i32
    %c0_i32_1 = arith.constant 0 : i32
    return %c0_i32, %c0_i32_0 : i32, i32
  }
  func.func @transform_5(%arg0: i32) -> (i32, i32) {
    %c0_i32 = arith.constant 0 : i32
    %c0_i32_0 = arith.constant 0 : i32
    %c0_i32_1 = arith.constant 0 : i32
    return %c0_i32, %c0_i32_0 : i32, i32
  }
  func.func @transform_6(%arg0: i32) -> (i32, i32) {
    %c0_i32 = arith.constant 0 : i32
    %c0_i32_0 = arith.constant 0 : i32
    %c0_i32_1 = arith.constant 0 : i32
    return %c0_i32, %c0_i32_0 : i32, i32
  }
  func.func @transform_7(%arg0: i32) -> (i32, i32) {
    %c0_i32 = arith.constant 0 : i32
    %c0_i32_0 = arith.constant 0 : i32
    %c0_i32_1 = arith.constant 0 : i32
    return %c0_i32, %c0_i32_0 : i32, i32
  }
  func.func @transform_8(%arg0: i32) -> (i32, i32) {
    %c0_i32 = arith.constant 0 : i32
    %c0_i32_0 = arith.constant 0 : i32
    %c0_i32_1 = arith.constant 0 : i32
    return %c0_i32, %c0_i32_0 : i32, i32
  }
  func.func @transform_9(%arg0: i32) -> (i32, i32) {
    %c0_i32 = arith.constant 0 : i32
    %c0_i32_0 = arith.constant 0 : i32
    %c0_i32_1 = arith.constant 0 : i32
    return %c0_i32, %c0_i32_0 : i32, i32
  }
  func.func @transform_10(%arg0: i32) -> (i32, i32) {
    %c0_i32 = arith.constant 0 : i32
    %c0_i32_0 = arith.constant 0 : i32
    %c0_i32_1 = arith.constant 0 : i32
    return %c0_i32, %c0_i32_0 : i32, i32
  }
  func.func @transform_11(%arg0: i32) -> (i32, i32) {
    %c0_i32 = arith.constant 0 : i32
    %c0_i32_0 = arith.constant 0 : i32
    %c0_i32_1 = arith.constant 0 : i32
    return %c0_i32, %c0_i32_0 : i32, i32
  }
  func.func @transform_12(%arg0: i32) -> (i32, i32) {
    %c0_i32 = arith.constant 0 : i32
    %c0_i32_0 = arith.constant 0 : i32
    %c0_i32_1 = arith.constant 0 : i32
    return %c0_i32, %c0_i32_0 : i32, i32
  }
  func.func @transform_13(%arg0: i32) -> (i32, i32) {
    %c0_i32 = arith.constant 0 : i32
    %c0_i32_0 = arith.constant 0 : i32
    %c0_i32_1 = arith.constant 0 : i32
    return %c0_i32, %c0_i32_0 : i32, i32
  }
  func.func @transform_14(%arg0: i32) -> (i32, i32) {
    %c0_i32 = arith.constant 0 : i32
    %c0_i32_0 = arith.constant 0 : i32
    %c0_i32_1 = arith.constant 0 : i32
    return %c0_i32, %c0_i32_0 : i32, i32
  }
  func.func @transform_15(%arg0: i32) -> (i32, i32) {
    %c0_i32 = arith.constant 0 : i32
    %c0_i32_0 = arith.constant 0 : i32
    return %arg0, %c0_i32 : i32, i32
  }
}

</mosaic_0001>

<bundles_post_ra>
// kernel: tpu_custom_call.1
= control target key start
LH: loop header
LB: loop body
LE: loop exit
PB: predicated region body
PF: predicated region fallthrough
CT: control target
= control target key end

     0   :  { %v2275_v9 = vmov 1983009808   ;;  %v61_v11 = vlaneseq  ;;  %vm1241_vm0 = vcmask 785408   ;;  %vm2277_vm1 = vmmov 0   ;;  %s3007_s2 = inlined_call_operand.vmem [shape: bf16[1024,224], index: 2, kind: input, shape index: {}]   ;;  %s3008_s0 = inlined_call_operand.vmem [shape: f32[2,1024], index: 0, kind: input, shape index: {}]   ;;  %s3009_s4 = inlined_call_operand.vmem [shape: bf16[224,256], index: 4, kind: input, shape index: {}]   ;;  %s3010_s6 = inlined_call_operand.vmem [shape: bf16[256,128], index: 6, kind: input, shape index: {}]   ;;  %s3011_s3 = inlined_call_operand.vmem [shape: f32[1,224], index: 3, kind: input, shape index: {}]   ;;  %s3012_s8 = inlined_call_operand.vmem [shape: bf16[128,64], index: 8, kind: input, shape index: {}]   ;;  %s3013_s5 = inlined_call_operand.vmem [shape: f32[1,256], index: 5, kind: input, shape index: {}]   ;;  %s3014_s7 = inlined_call_operand.vmem [shape: f32[1,128], index: 7, kind: input, shape index: {}]   ;;  %s3015_s10 = inlined_call_operand.vmem [shape: bf16[64,32], index: 10, kind: input, shape index: {}]   ;;  %s3016_s1 = inlined_call_operand.vmem [shape: f32[2,1], index: 1, kind: input, shape index: {}]   ;;  %s3017_s9 = inlined_call_operand.vmem [shape: f32[1,64], index: 9, kind: input, shape index: {}]   ;;  %s3018_s14 = inlined_call_operand.<no memory space> [shape: f32[1,1], index: 14, kind: input, shape index: {}]   ;;  %s3019_s11 = inlined_call_operand.vmem [shape: f32[1,32], index: 11, kind: input, shape index: {}]   ;;  %s3020_s12 = inlined_call_operand.vmem [shape: f32[1,32], index: 12, kind: input, shape index: {}]   ;;  %s3021_s13 = inlined_call_operand.vmem [shape: f32[1,32], index: 13, kind: input, shape index: {}]   ;;  %s3022_s15 = inlined_call_operand.vmem [shape: f32[2,1], index: 15, kind: output, shape index: {}]  }
   0x1   :  { %v1997_v0 = vld [vmem:[%s3007_s2 + $0x104] ss:$8 sps:$4 sm:$0xff]   ;;  %v1999_v1 = vld [vmem:[%s3007_s2 + $0x100] ss:$8 sps:$4 sm:$0xff]   ;;  %v2000_v2 = vld [vmem:[%s3007_s2 + $0x114] ss:$8 sps:$4 sm:$0xff]   ;;  %v59_v10 = vunpack.c.l.s4 %v2275_v9 }
   0x2   :  { %928 = vmatprep.subr.bf16.mxu0 %v1997_v0  ;;  %v2002_v3 = vld [vmem:[%s3007_s2 + $0x110] ss:$8 sps:$4 sm:$0xff]   ;;  %v2003_v4 = vld [vmem:[%s3007_s2 + $0x124] ss:$8 sps:$4 sm:$0xff]   ;;  %v2005_v5 = vld [vmem:[%s3007_s2 + $0x120] ss:$8 sps:$4 sm:$0xff]  }
   0x3   :  { %929 = vmatpush1.bf16.msra.mxu0 %v1999_v1  ;;  %v2006_v6 = vld [vmem:[%s3007_s2 + $0x134] ss:$8 sps:$4 sm:$0xff]   ;;  %v2008_v7 = vld [vmem:[%s3007_s2 + $0x130] ss:$8 sps:$4 sm:$0xff]   ;;  %v2009_v8 = vld [vmem:[%s3007_s2 + $0x144] ss:$8 sps:$4 sm:$0xff]   ;;  %v60_v14 = vunpack.c.0.s8 %v59_v10 }
   0x4   :  { %930 = vmatprep.subr.bf16.mxu0 %v2000_v2  ;;  %v2011_v12 = vld [vmem:[%s3007_s2 + $0x140] ss:$8 sps:$4 sm:$0xff]   ;;  %v2012_v13 = vld [vmem:[%s3007_s2 + $0x154] ss:$8 sps:$4 sm:$0xff]   ;;  %v2392_v15 = vshrl.u32 %v61_v11, 7  ;;  %vm1638_vm2 = vcmask 523264  }
   0x5   :  { %v2014_v16 = vld [vmem:[%s3007_s2 + $0x150] ss:$8 sps:$4 sm:$0xff]   ;;  %v2015_v17 = vld [vmem:[%s3007_s2 + $0x164] ss:$8 sps:$4 sm:$0xff]   ;;  %v2017_v21 = vld [vmem:[%s3007_s2 + $0x160] ss:$8 sps:$4 sm:$0xff]  }
   0x6   :  { %v2401_v18 = vsub.s32 %v60_v14, %v2392_v15  ;;  %v53_v19 = vld [vmem:[%s3008_s0] sm:$0xff]  ;;  %v2018_v22 = vld [vmem:[%s3007_s2 + $0x174] ss:$8 sps:$4 sm:$0xff]   ;;  %v2020_v25 = vld [vmem:[%s3007_s2 + $0x170] ss:$8 sps:$4 sm:$0xff]   ;;  %vm1702_vm3 = vcmask 254976  }
   0x7   :  { %931 = vmatpush1.bf16.msra.mxu0 %v2002_v3  ;;  %v57_v20 = vcombine.high %v53_v19, %v53_v19  ;;  %v2021_v26 = vld [vmem:[%s3007_s2 + $0x184] ss:$8 sps:$4 sm:$0xff]   ;;  %v2023_v28 = vld [vmem:[%s3007_s2 + $0x180] ss:$8 sps:$4 sm:$0xff]   ;;  %v2024_v29 = vld [vmem:[%s3007_s2 + $0x194] ss:$8 sps:$4 sm:$0xff]  }
   0x8   :  { %932 = vmatprep.subr.bf16.mxu0 %v2003_v4  ;;  %v2026_v30 = vld [vmem:[%s3007_s2 + $0x190] ss:$8 sps:$4 sm:$0xff]   ;;  %v2027_v31 = vld [vmem:[%s3007_s2 + $0x1a4] ss:$8 sps:$4 sm:$0xff]   ;;  %v2029_v32 = vld [vmem:[%s3007_s2 + $0x1a0] ss:$8 sps:$4 sm:$0xff]   ;;  %v2492_v50 = vrot.slane %v53_v19, %v2401_v18 }
   0x9   :  { %v2413_v23 = vrot.slane %v57_v20, %v2401_v18  ;;  %v2030_v33 = vld [vmem:[%s3007_s2 + $0x1b4] ss:$8 sps:$4 sm:$0xff]   ;;  %v2091_v34 = vld [vmem:[%s3007_s2 + $0x4] ss:$8 sps:$4 sm:$0xff]   ;;  %v2093_v35 = vld [vmem:[%s3007_s2] ss:$8 sps:$4 sm:$0xff]  }
   0xa   :  { %v2032_v36 = vld [vmem:[%s3007_s2 + $0x1b0] ss:$8 sps:$4 sm:$0xff]   ;;  %v2033_v37 = vld [vmem:[%s3007_s2 + $0x1c4] ss:$8 sps:$4 sm:$0xff]   ;;  %887 = vmatprep.subr.bf16.mxu1 %v2091_v34  ;;  %v2097_v38 = vld [vmem:[%s3007_s2 + $0x14] ss:$8 sps:$4 sm:$0xff]   ;;  %v72_v54 = vcombine.high %v2492_v50, %v2492_v50 }
   0xb   :  { %933 = vmatpush1.bf16.msra.mxu0 %v2005_v5  ;;  %v73_v24 = vcombine.high %v2413_v23, %v2413_v23  ;;  %888 = vmatpush1.bf16.msra.mxu1 %v2093_v35  ;;  %v2099_v39 = vld [vmem:[%s3007_s2 + $0x10] ss:$8 sps:$4 sm:$0xff]   ;;  %v2035_v40 = vld [vmem:[%s3007_s2 + $0x1c0] ss:$8 sps:$4 sm:$0xff]   ;;  %v2036_v41 = vld [vmem:[%s3007_s2 + $0x1d4] ss:$8 sps:$4 sm:$0xff]   ;;  %v101_v62 = vpack.c.bf16 %v2413_v23, %v2413_v23 }
   0xc   :  { %934 = vmatprep.subr.bf16.mxu0 %v2006_v6  ;;  %889 = vmatprep.subr.bf16.mxu1 %v2097_v38  ;;  %v2103_v42 = vld [vmem:[%s3007_s2 + $0x24] ss:$8 sps:$4 sm:$0xff]   ;;  %v2105_v43 = vld [vmem:[%s3007_s2 + $0x20] ss:$8 sps:$4 sm:$0xff]   ;;  %v2109_v44 = vld [vmem:[%s3007_s2 + $0x34] ss:$8 sps:$4 sm:$0xff]   ;;  %v100_v57 = vpack.c.bf16 %v72_v54, %v72_v54 }
   0xd   :  { %v102_v27 = vpack.c.bf16 %v73_v24, %v73_v24  ;;  %v2038_v45 = vld [vmem:[%s3007_s2 + $0x1d0] ss:$8 sps:$4 sm:$0xff]   ;;  %v2039_v46 = vld [vmem:[%s3007_s2 + $0x1e4] ss:$8 sps:$4 sm:$0xff]   ;;  %v2041_v51 = vld [vmem:[%s3007_s2 + $0x1e0] ss:$8 sps:$4 sm:$0xff]  }
   0xe   :  { %v2483_v47 = vld [vmem:[%s3008_s0 + $0x8] sm:$0xff]  ;;  %v2111_v48 = vld [vmem:[%s3007_s2 + $0x30] ss:$8 sps:$4 sm:$0xff]   ;;  %v2042_v53 = vld [vmem:[%s3007_s2 + $0x1f4] ss:$8 sps:$4 sm:$0xff]   ;;  %919 = vmatprep.mubr.bf16.mxu1 %v100_v57  ;;  %vm1714_vm4 = vcmask 1024  }
   0xf   :  { %935 = vmatpush1.bf16.msra.mxu0 %v2008_v7  ;;  %960 = vmatprep.mubr.bf16.mxu0 %v102_v27  ;;  %v2115_v49 = vld [vmem:[%s3007_s2 + $0x44] ss:$8 sps:$4 sm:$0xff]   ;;  %v2499_v52 = vrot.slane %v2483_v47, %v2401_v18  ;;  %v2117_v55 = vld [vmem:[%s3007_s2 + $0x40] ss:$8 sps:$4 sm:$0xff]   ;;  %v2121_v56 = vld [vmem:[%s3007_s2 + $0x54] ss:$8 sps:$4 sm:$0xff]  }
  0x10   :  { %936 = vmatprep.subr.bf16.mxu0 %v2009_v8  ;;  %890 = vmatpush1.bf16.msra.mxu1 %v2099_v39  ;;  %v2044_v58 = vld [vmem:[%s3007_s2 + $0x1f0] ss:$8 sps:$4 sm:$0xff]   ;;  %v2048_v60 = vld [vmem:[%s3007_s2 + $0x204] ss:$8 sps:$4 sm:$0xff]   ;;  %v2046_v0 = vld [vmem:[%s3007_s2 + $0x200] ss:$8 sps:$4 sm:$0xff]  }
  0x11   :  { %891 = vmatprep.subr.bf16.mxu1 %v2103_v42  ;;  %v89_v59 = vcombine.high %v2499_v52, %v2499_v52  ;;  %v2123_v61 = vld [vmem:[%s3007_s2 + $0x50] ss:$8 sps:$4 sm:$0xff]   ;;  %v2127_v63 = vld [vmem:[%s3007_s2 + $0x64] ss:$8 sps:$4 sm:$0xff]   ;;  %v2051_v2 = vld [vmem:[%s3007_s2 + $0x214] ss:$8 sps:$4 sm:$0xff]  }
  0x12   :  { %v2129_v3 = vld [vmem:[%s3007_s2 + $0x60] ss:$8 sps:$4 sm:$0xff]   ;;  %v2133_v4 = vld [vmem:[%s3007_s2 + $0x74] ss:$8 sps:$4 sm:$0xff]   ;;  %v2049_v5 = vld [vmem:[%s3007_s2 + $0x210] ss:$8 sps:$4 sm:$0xff]  }
  0x13   :  { %937 = vmatpush1.bf16.msra.mxu0 %v2011_v12  ;;  %v104_v1 = vpack.c.bf16 %v89_v59, %v89_v59  ;;  %v2054_v6 = vld [vmem:[%s3007_s2 + $0x224] ss:$8 sps:$4 sm:$0xff]   ;;  %v2135_v7 = vld [vmem:[%s3007_s2 + $0x70] ss:$8 sps:$4 sm:$0xff]   ;;  %v2052_v9 = vld [vmem:[%s3007_s2 + $0x220] ss:$8 sps:$4 sm:$0xff]   ;;  %v74_v59 = vcombine.high %v2483_v47, %v2483_v47 }
  0x14   :  { %938 = vmatprep.subr.bf16.mxu0 %v2012_v13  ;;  %892 = vmatpush1.bf16.msra.mxu1 %v2105_v43  ;;  %v2139_v8 = vld [vmem:[%s3007_s2 + $0x84] ss:$8 sps:$4 sm:$0xff]   ;;  %v2057_v10 = vld [vmem:[%s3007_s2 + $0x234] ss:$8 sps:$4 sm:$0xff]   ;;  %v2141_v11 = vld [vmem:[%s3007_s2 + $0x80] ss:$8 sps:$4 sm:$0xff]  }
  0x15   :  { %893 = vmatprep.subr.bf16.mxu1 %v2109_v44  ;;  %v2145_v12 = vld [vmem:[%s3007_s2 + $0x94] ss:$8 sps:$4 sm:$0xff]   ;;  %v2055_v13 = vld [vmem:[%s3007_s2 + $0x230] ss:$8 sps:$4 sm:$0xff]   ;;  %v2060_v14 = vld [vmem:[%s3007_s2 + $0x244] ss:$8 sps:$4 sm:$0xff]  }
  0x16   :  { %v2058_v19 = vld [vmem:[%s3007_s2 + $0x240] ss:$8 sps:$4 sm:$0xff]   ;;  %v2063_v20 = vld [vmem:[%s3007_s2 + $0x254] ss:$8 sps:$4 sm:$0xff]   ;;  %v2061_v23 = vld [vmem:[%s3007_s2 + $0x250] ss:$8 sps:$4 sm:$0xff]  }
  0x17   :  { %939 = vmatpush1.bf16.msra.mxu0 %v2014_v16  ;;  %v2147_v16 = vld [vmem:[%s3007_s2 + $0x90] ss:$8 sps:$4 sm:$0xff]   ;;  %v2066_v24 = vld [vmem:[%s3007_s2 + $0x264] ss:$8 sps:$4 sm:$0xff]   ;;  %v2064_v27 = vld [vmem:[%s3007_s2 + $0x260] ss:$8 sps:$4 sm:$0xff]  }
  0x18   :  { %940 = vmatprep.subr.bf16.mxu0 %v2015_v17  ;;  %894 = vmatpush1.bf16.msra.mxu1 %v2111_v48  ;;  %v2151_v17 = vld [vmem:[%s3007_s2 + $0xa4] ss:$8 sps:$4 sm:$0xff]   ;;  %v2171_v34 = vld [vmem:[%s3007_s2 + $0xd0] ss:$8 sps:$4 sm:$0xff]   ;;  %v2181_v38 = vld [vmem:[%s3007_s2 + $0xf4] ss:$8 sps:$4 sm:$0xff]  }
  0x19   :  { %895 = vmatprep.subr.bf16.mxu1 %v2115_v49  ;;  %v2175_v35 = vld [vmem:[%s3007_s2 + $0xe4] ss:$8 sps:$4 sm:$0xff]   ;;  %v2073_v39 = vld [vmem:[%s3007_s2 + $0x290] ss:$8 sps:$4 sm:$0xff]   ;;  %v2076_v43 = vld [vmem:[%s3007_s2 + $0x2a0] ss:$8 sps:$4 sm:$0xff]  }
  0x1a   :  { %v2193_v42 = vld [vmem:[%s3009_s4 + $0x4] ss:$8 sps:$4 sm:$0xff]   ;;  %v2081_v44 = vld [vmem:[%s3007_s2 + $0x2b4] ss:$8 sps:$4 sm:$0xff]   ;;  %v2079_v49 = vld [vmem:[%s3007_s2 + $0x2b0] ss:$8 sps:$4 sm:$0xff]  }
  0x1b   :  { %941 = vmatpush1.bf16.msra.mxu0 %v2017_v21  ;;  %v2153_v21 = vld [vmem:[%s3007_s2 + $0xa0] ss:$8 sps:$4 sm:$0xff]   ;;  %v2196_v48 = vld [vmem:[%s3009_s4 + $0x14] ss:$8 sps:$4 sm:$0xff]  }
  0x1c   :  { %942 = vmatprep.subr.bf16.mxu0 %v2018_v22  ;;  %896 = vmatpush1.bf16.msra.mxu1 %v2117_v55  ;;  %v2157_v22 = vld [vmem:[%s3007_s2 + $0xb4] ss:$8 sps:$4 sm:$0xff]   ;;  %v2082_v54 = vld [vmem:[%s3007_s2 + $0x2c0] ss:$8 sps:$4 sm:$0xff]  }
  0x1d   :  { %897 = vmatprep.subr.bf16.mxu1 %v2121_v56  ;;  %v2087_v55 = vld [vmem:[%s3007_s2 + $0x2d4] ss:$8 sps:$4 sm:$0xff]   ;;  %v2197_v56 = vld [vmem:[%s3009_s4 + $0x20] ss:$8 sps:$4 sm:$0xff]  }
  0x1e   :  { %v2202_v57 = vld [vmem:[%s3009_s4 + $0x34] ss:$8 sps:$4 sm:$0xff]   ;;  %v2088_v47 = vld [vmem:[%s3007_s2 + $0x2e0] ss:$8 sps:$4 sm:$0xff]  }
  0x1f   :  { %943 = vmatpush1.bf16.msra.mxu0 %v2020_v25  ;;  %v2159_v25 = vld [vmem:[%s3007_s2 + $0xb0] ss:$8 sps:$4 sm:$0xff]  }
  0x20   :  { %944 = vmatprep.subr.bf16.mxu0 %v2021_v26  ;;  %898 = vmatpush1.bf16.msra.mxu1 %v2123_v61  ;;  %v2163_v26 = vld [vmem:[%s3007_s2 + $0xc4] ss:$8 sps:$4 sm:$0xff]   ;;  %v2200_v61 = vld [vmem:[%s3009_s4 + $0x30] ss:$8 sps:$4 sm:$0xff]  }
  0x21   :  { %899 = vmatprep.subr.bf16.mxu1 %v2127_v63  ;;  %v2704_v63 = vrot.slane %v74_v59, %v2401_v18  ;;  %v2094_v18 = vld [vmem:[%s3007_s2 + $0x2f0] ss:$8 sps:$4 sm:$0xff]   ;;  %v2233_v59 = vld [vmem:[%s3010_s6 + $0x40] sm:$0xff]  }
  0x23   :  { %945 = vmatpush1.bf16.msra.mxu0 %v2023_v28  ;;  %v2069_v28 = vld [vmem:[%s3007_s2 + $0x274] ss:$8 sps:$4 sm:$0xff]  }
  0x24   :  { %946 = vmatprep.subr.bf16.mxu0 %v2024_v29  ;;  %900 = vmatpush1.bf16.msra.mxu1 %v2129_v3  ;;  %v2165_v29 = vld [vmem:[%s3007_s2 + $0xc0] ss:$8 sps:$4 sm:$0xff]   ;;  %v90_v3 = vcombine.high %v2704_v63, %v2704_v63 }
  0x25   :  { %901 = vmatprep.subr.bf16.mxu1 %v2133_v4  ;;  %v2102_v4 = vld [vmem:[%s3007_s2 + $0x304] ss:$8 sps:$4 sm:$0xff]  }
  0x27   :  { %947 = vmatpush1.bf16.msra.mxu0 %v2026_v30  ;;  %v2169_v30 = vld [vmem:[%s3007_s2 + $0xd4] ss:$8 sps:$4 sm:$0xff]  }
  0x28   :  { %948 = vmatprep.subr.bf16.mxu0 %v2027_v31  ;;  %902 = vmatpush1.bf16.msra.mxu1 %v2135_v7  ;;  %v2067_v31 = vld [vmem:[%s3007_s2 + $0x270] ss:$8 sps:$4 sm:$0xff]   ;;  %v2211_v7 = vld [vmem:[%s3009_s4 + $0x64] ss:$8 sps:$4 sm:$0xff]  }
  0x29   :  { %903 = vmatprep.subr.bf16.mxu1 %v2139_v8  ;;  %v2100_v8 = vld [vmem:[%s3007_s2 + $0x300] ss:$8 sps:$4 sm:$0xff]  }
  0x2b   :  { %949 = vmatpush1.bf16.msra.mxu0 %v2029_v32  ;;  %v2072_v32 = vld [vmem:[%s3007_s2 + $0x284] ss:$8 sps:$4 sm:$0xff]  }
  0x2c   :  { %950 = vmatprep.subr.bf16.mxu0 %v2030_v33  ;;  %904 = vmatpush1.bf16.msra.mxu1 %v2141_v11  ;;  %v2070_v33 = vld [vmem:[%s3007_s2 + $0x280] ss:$8 sps:$4 sm:$0xff]   ;;  %v2106_v11 = vld [vmem:[%s3007_s2 + $0x310] ss:$8 sps:$4 sm:$0xff]  }
  0x2d   :  { %905 = vmatprep.subr.bf16.mxu1 %v2145_v12  ;;  %v2114_v12 = vld [vmem:[%s3007_s2 + $0x324] ss:$8 sps:$4 sm:$0xff]  }
  0x2f   :  { %951 = vmatpush1.bf16.msra.mxu0 %v2032_v36  ;;  %v2075_v36 = vld [vmem:[%s3007_s2 + $0x294] ss:$8 sps:$4 sm:$0xff]  }
  0x30   :  { %952 = vmatprep.subr.bf16.mxu0 %v2033_v37  ;;  %906 = vmatpush1.bf16.msra.mxu1 %v2147_v16  ;;  %v2177_v37 = vld [vmem:[%s3007_s2 + $0xe0] ss:$8 sps:$4 sm:$0xff]   ;;  %v2118_v16 = vld [vmem:[%s3007_s2 + $0x330] ss:$8 sps:$4 sm:$0xff]  }
  0x31   :  { %907 = vmatprep.subr.bf16.mxu1 %v2151_v17  ;;  %v2126_v17 = vld [vmem:[%s3007_s2 + $0x344] ss:$8 sps:$4 sm:$0xff]  }
  0x33   :  { %953 = vmatpush1.bf16.msra.mxu0 %v2035_v40  ;;  %v2078_v40 = vld [vmem:[%s3007_s2 + $0x2a4] ss:$8 sps:$4 sm:$0xff]  }
  0x34   :  { %954 = vmatprep.subr.bf16.mxu0 %v2036_v41  ;;  %908 = vmatpush1.bf16.msra.mxu1 %v2153_v21  ;;  %v2183_v41 = vld [vmem:[%s3007_s2 + $0xf0] ss:$8 sps:$4 sm:$0xff]  }
  0x35   :  { %909 = vmatprep.subr.bf16.mxu1 %v2157_v22  ;;  %v2130_v21 = vld [vmem:[%s3007_s2 + $0x350] ss:$8 sps:$4 sm:$0xff]   ;;  %v2138_v22 = vld [vmem:[%s3007_s2 + $0x364] ss:$8 sps:$4 sm:$0xff]  }
  0x37   :  { %955 = vmatpush1.bf16.msra.mxu0 %v2038_v45  ;;  %v99_v45 = vpack.c.bf16 %v2492_v50, %v2492_v50  ;;  %v2084_v50 = vld [vmem:[%s3007_s2 + $0x2c4] ss:$8 sps:$4 sm:$0xff]  }
  0x38   :  { %956 = vmatprep.subr.bf16.mxu0 %v2039_v46  ;;  %910 = vmatpush1.bf16.msra.mxu1 %v2159_v25  ;;  %v2191_v46 = vld [vmem:[%s3009_s4] ss:$8 sps:$4 sm:$0xff]   ;;  %v2142_v25 = vld [vmem:[%s3007_s2 + $0x370] ss:$8 sps:$4 sm:$0xff]  }
  0x39   :  { %911 = vmatprep.subr.bf16.mxu1 %v2163_v26  ;;  %v2150_v26 = vld [vmem:[%s3007_s2 + $0x384] ss:$8 sps:$4 sm:$0xff]  }
  0x3b   :  { %957 = vmatpush1.bf16.msra.mxu0 %v2041_v51  ;;  %v2194_v51 = vld [vmem:[%s3009_s4 + $0x10] ss:$8 sps:$4 sm:$0xff]  }
  0x3c   :  { %958 = vmatprep.subr.bf16.mxu0 %v2042_v53  ;;  %912 = vmatpush1.bf16.msra.mxu1 %v2165_v29  ;;  %v2199_v53 = vld [vmem:[%s3009_s4 + $0x24] ss:$8 sps:$4 sm:$0xff]   ;;  %v2154_v29 = vld [vmem:[%s3007_s2 + $0x390] ss:$8 sps:$4 sm:$0xff]  }
  0x3d   :  { %913 = vmatprep.subr.bf16.mxu1 %v2169_v30  ;;  %v2162_v30 = vld [vmem:[%s3007_s2 + $0x3a4] ss:$8 sps:$4 sm:$0xff]  }
  0x3f   :  { %959 = vmatpush1.bf16.msra.mxu0 %v2044_v58  ;;  %v2085_v58 = vld [vmem:[%s3007_s2 + $0x2d0] ss:$8 sps:$4 sm:$0xff]  }
  0x40   :  { %969 = vmatprep.subr.bf16.mxu0 %v2048_v60  ;;  %914 = vmatpush1.bf16.msra.mxu1 %v2171_v34  ;;  %v2090_v60 = vld [vmem:[%s3007_s2 + $0x2e4] ss:$8 sps:$4 sm:$0xff]  }
  0x41   :  { %915 = vmatprep.subr.bf16.mxu1 %v2175_v35  ;;  %v2174_v34 = vld [vmem:[%s3007_s2 + $0x3c4] ss:$8 sps:$4 sm:$0xff]   ;;  %v2172_v35 = vld [vmem:[%s3007_s2 + $0x3c0] ss:$8 sps:$4 sm:$0xff]  }
  0x42   :  { %961 = vmatmul.mubr.bf16.vlgmr.msra.gmra.mrb[0].mxu0 %v101_v62  ;;  %v2205_v62 = vld [vmem:[%s3009_s4 + $0x44] ss:$8 sps:$4 sm:$0xff]  }
  0x43   :  { %970 = vmatpush1.bf16.msra.mxu0 %v2046_v0  ;;  %1001 = vmatprep.mubr.bf16.mxu0 %v104_v1  ;;  %v2096_v0 = vld [vmem:[%s3007_s2 + $0x2f4] ss:$8 sps:$4 sm:$0xff]   ;;  %v2203_v1 = vld [vmem:[%s3009_s4 + $0x40] ss:$8 sps:$4 sm:$0xff]  }
  0x44   :  { %971 = vmatprep.subr.bf16.mxu0 %v2051_v2  ;;  %916 = vmatpush1.bf16.msra.mxu1 %v2177_v37  ;;  %v2208_v2 = vld [vmem:[%s3009_s4 + $0x54] ss:$8 sps:$4 sm:$0xff]   ;;  %v2178_v37 = vld [vmem:[%s3007_s2 + $0x3d0] ss:$8 sps:$4 sm:$0xff]  }
  0x45   :  { %917 = vmatprep.subr.bf16.mxu1 %v2181_v38  ;;  %v2186_v38 = vld [vmem:[%s3007_s2 + $0x3e4] ss:$8 sps:$4 sm:$0xff]  }
  0x47   :  { %972 = vmatpush1.bf16.msra.mxu0 %v2049_v5  ;;  %v2206_v5 = vld [vmem:[%s3009_s4 + $0x50] ss:$8 sps:$4 sm:$0xff]  }
  0x48   :  { %973 = vmatprep.subr.bf16.mxu0 %v2054_v6  ;;  %918 = vmatpush1.bf16.msra.mxu1 %v2183_v41  ;;  %v103_v6 = vpack.c.bf16 %v2499_v52, %v2499_v52  ;;  %v2209_v52 = vld [vmem:[%s3009_s4 + $0x60] ss:$8 sps:$4 sm:$0xff]   ;;  %v2187_v41 = vld [vmem:[%s3007_s2 + $0x3f0] ss:$8 sps:$4 sm:$0xff]  }
  0x49   :  { %1245 = vmatprep.subr.bf16.mxu1 %v2193_v42  ;;  %v105_v42 = vpack.c.bf16 %v2704_v63, %v2704_v63  ;;  %v239_v63 = vsub.s32 0, %v2392_v15 }
  0x4b   :  { %974 = vmatpush1.bf16.msra.mxu0 %v2052_v9  ;;  %920 = vmatmul.mubr.bf16.vlgmr.msra.gmra.mrb[0].mxu1 %v99_v45  ;;  %v106_v9 = vpack.c.bf16 %v90_v3, %v90_v3  ;;  %v2217_v45 = vld [vmem:[%s3009_s4 + $0x84] ss:$8 sps:$4 sm:$0xff]  }
  0x4c   :  { %975 = vmatprep.subr.bf16.mxu0 %v2057_v10  ;;  %1246 = vmatpush1.bf16.msra.mxu1 %v2191_v46  ;;  %v2108_v10 = vld [vmem:[%s3007_s2 + $0x314] ss:$8 sps:$4 sm:$0xff]   ;;  %v2215_v46 = vld [vmem:[%s3009_s4 + $0x80] ss:$8 sps:$4 sm:$0xff]  }
  0x4d   :  { %1247 = vmatprep.subr.bf16.mxu1 %v2196_v48  ;;  %v2220_v48 = vld [vmem:[%s3009_s4 + $0x94] ss:$8 sps:$4 sm:$0xff]  }
  0x4f   :  { %976 = vmatpush1.bf16.msra.mxu0 %v2055_v13  ;;  %v2112_v13 = vld [vmem:[%s3007_s2 + $0x320] ss:$8 sps:$4 sm:$0xff]  }
  0x50   :  { %977 = vmatprep.subr.bf16.mxu0 %v2060_v14  ;;  %1248 = vmatpush1.bf16.msra.mxu1 %v2194_v51  ;;  %v2120_v14 = vld [vmem:[%s3007_s2 + $0x334] ss:$8 sps:$4 sm:$0xff]   ;;  %v2221_v51 = vld [vmem:[%s3009_s4 + $0xa0] ss:$8 sps:$4 sm:$0xff]  }
  0x51   :  { %1249 = vmatprep.subr.bf16.mxu1 %v2199_v53  ;;  %v2226_v53 = vld [vmem:[%s3009_s4 + $0xb4] ss:$8 sps:$4 sm:$0xff]  }
  0x53   :  { %978 = vmatpush1.bf16.msra.mxu0 %v2058_v19  ;;  %v2124_v19 = vld [vmem:[%s3007_s2 + $0x340] ss:$8 sps:$4 sm:$0xff]  }
  0x54   :  { %979 = vmatprep.subr.bf16.mxu0 %v2063_v20  ;;  %1250 = vmatpush1.bf16.msra.mxu1 %v2197_v56  ;;  %v2132_v20 = vld [vmem:[%s3007_s2 + $0x354] ss:$8 sps:$4 sm:$0xff]   ;;  %v2227_v56 = vld [vmem:[%s3009_s4 + $0xc0] ss:$8 sps:$4 sm:$0xff]  }
  0x55   :  { %1251 = vmatprep.subr.bf16.mxu1 %v2202_v57  ;;  %v2232_v57 = vld [vmem:[%s3009_s4 + $0xd4] ss:$8 sps:$4 sm:$0xff]  }
  0x57   :  { %980 = vmatpush1.bf16.msra.mxu0 %v2061_v23  ;;  %v2136_v23 = vld [vmem:[%s3007_s2 + $0x360] ss:$8 sps:$4 sm:$0xff]  }
  0x58   :  { %981 = vmatprep.subr.bf16.mxu0 %v2066_v24  ;;  %1252 = vmatpush1.bf16.msra.mxu1 %v2200_v61  ;;  %v2144_v24 = vld [vmem:[%s3007_s2 + $0x374] ss:$8 sps:$4 sm:$0xff]  }
  0x59   :  { %1253 = vmatprep.subr.bf16.mxu1 %v2205_v62 }
  0x5b   :  { %982 = vmatpush1.bf16.msra.mxu0 %v2064_v27  ;;  %v2148_v27 = vld [vmem:[%s3007_s2 + $0x380] ss:$8 sps:$4 sm:$0xff]  }
  0x5c   :  { %983 = vmatprep.subr.bf16.mxu0 %v2069_v28  ;;  %1254 = vmatpush1.bf16.msra.mxu1 %v2203_v1  ;;  %v2156_v28 = vld [vmem:[%s3007_s2 + $0x394] ss:$8 sps:$4 sm:$0xff]   ;;  %v243_v1 = vsub.s32 1, %v2392_v15  ;;  %v2249_v15 = vld [vmem:[%s3012_s8] sm:$0xff]  }
  0x5d   :  { %1255 = vmatprep.subr.bf16.mxu1 %v2208_v2 }
  0x5f   :  { %984 = vmatpush1.bf16.msra.mxu0 %v2067_v31  ;;  %v2160_v31 = vld [vmem:[%s3007_s2 + $0x3a0] ss:$8 sps:$4 sm:$0xff]  }
  0x60   :  { %985 = vmatprep.subr.bf16.mxu0 %v2072_v32  ;;  %1256 = vmatpush1.bf16.msra.mxu1 %v2206_v5  ;;  %v2168_v32 = vld [vmem:[%s3007_s2 + $0x3b4] ss:$8 sps:$4 sm:$0xff]  }
  0x61   :  { %1257 = vmatprep.subr.bf16.mxu1 %v2211_v7 }
  0x63   :  { %986 = vmatpush1.bf16.msra.mxu0 %v2070_v33  ;;  %v2166_v33 = vld [vmem:[%s3007_s2 + $0x3b0] ss:$8 sps:$4 sm:$0xff]  }
  0x64   :  { %987 = vmatprep.subr.bf16.mxu0 %v2075_v36  ;;  %1258 = vmatpush1.bf16.msra.mxu1 %v2209_v52  ;;  %v2180_v36 = vld [vmem:[%s3007_s2 + $0x3d4] ss:$8 sps:$4 sm:$0xff]  }
  0x67   :  { %988 = vmatpush1.bf16.msra.mxu0 %v2073_v39  ;;  %v2184_v39 = vld [vmem:[%s3007_s2 + $0x3e0] ss:$8 sps:$4 sm:$0xff]  }
  0x68   :  { %989 = vmatprep.subr.bf16.mxu0 %v2078_v40  ;;  %v2189_v40 = vld [vmem:[%s3007_s2 + $0x3f4] ss:$8 sps:$4 sm:$0xff]  }
  0x6b   :  { %990 = vmatpush1.bf16.msra.mxu0 %v2076_v43  ;;  %v2212_v43 = vld [vmem:[%s3009_s4 + $0x70] ss:$8 sps:$4 sm:$0xff]  }
  0x6c   :  { %991 = vmatprep.subr.bf16.mxu0 %v2081_v44  ;;  %v2214_v44 = vld [vmem:[%s3009_s4 + $0x74] ss:$8 sps:$4 sm:$0xff]  }
  0x6d   :  { %1259 = vmatprep.subr.bf16.mxu1 %v2214_v44 }
  0x6e   :  { %1260 = vmatpush1.bf16.msra.mxu1 %v2212_v43 }
  0x6f   :  { %992 = vmatpush1.bf16.msra.mxu0 %v2079_v49  ;;  %1261 = vmatprep.subr.bf16.mxu1 %v2217_v45  ;;  %v2218_v49 = vld [vmem:[%s3009_s4 + $0x90] ss:$8 sps:$4 sm:$0xff]  }
  0x70   :  { %993 = vmatprep.subr.bf16.mxu0 %v2084_v50  ;;  %v2223_v50 = vld [vmem:[%s3009_s4 + $0xa4] ss:$8 sps:$4 sm:$0xff]  }
  0x72   :  { %1262 = vmatpush1.bf16.msra.mxu1 %v2215_v46 }
  0x73   :  { %994 = vmatpush1.bf16.msra.mxu0 %v2082_v54  ;;  %1263 = vmatprep.subr.bf16.mxu1 %v2220_v48  ;;  %v2224_v54 = vld [vmem:[%s3009_s4 + $0xb0] ss:$8 sps:$4 sm:$0xff]  }
  0x74   :  { %995 = vmatprep.subr.bf16.mxu0 %v2087_v55  ;;  %v2229_v55 = vld [vmem:[%s3009_s4 + $0xc4] ss:$8 sps:$4 sm:$0xff]  }
  0x76   :  { %1264 = vmatpush1.bf16.msra.mxu1 %v2218_v49 }
  0x77   :  { %996 = vmatpush1.bf16.msra.mxu0 %v2085_v58  ;;  %1265 = vmatprep.subr.bf16.mxu1 %v2223_v50  ;;  %v2230_v58 = vld [vmem:[%s3009_s4 + $0xd0] ss:$8 sps:$4 sm:$0xff]  }
  0x78   :  { %997 = vmatprep.subr.bf16.mxu0 %v2090_v60 }
  0x7a   :  { %1266 = vmatpush1.bf16.msra.mxu1 %v2221_v51 }
  0x7b   :  { %998 = vmatpush1.bf16.msra.mxu0 %v2088_v47  ;;  %1267 = vmatprep.subr.bf16.mxu1 %v2226_v53 }
  0x7c   :  { %999 = vmatprep.subr.bf16.mxu0 %v2096_v0  ;;  %v235_v0 = vld [vmem:[%s3011_s3] sm:$0x3] }
  0x7d   :  { %v240_v2 = vrot.slane %v235_v0, %v239_v63 }
  0x7e   :  { %1268 = vmatpush1.bf16.msra.mxu1 %v2224_v54 }
  0x7f   :  { %1000 = vmatpush1.bf16.msra.mxu0 %v2094_v18  ;;  %1269 = vmatprep.subr.bf16.mxu1 %v2229_v55  ;;  %v244_v18 = vrot.slane %v235_v0, %v243_v1  ;;  %v2256_v0 = vld [vmem:[%s3012_s8 + $0x38] sm:$0xff]  }
  0x80   :  { %1010 = vmatprep.subr.bf16.mxu0 %v2102_v4 }
  0x82   :  { %1002 = vmatmul.mubr.bf16.vlgmr.msra.gmra.mrb[0].mxu0 %v103_v6  ;;  %1270 = vmatpush1.bf16.msra.mxu1 %v2227_v56 }
  0x83   :  { %1011 = vmatpush1.bf16.msra.mxu0 %v2100_v8  ;;  %1042 = vmatprep.mubr.bf16.mxu0 %v106_v9 }
  0x84   :  { %1012 = vmatprep.subr.bf16.mxu0 %v2108_v10  ;;  %1271 = vmatprep.subr.bf16.mxu1 %v2232_v57 }
  0x86   :  { %1272 = vmatpush1.bf16.msra.mxu1 %v2230_v58 }
  0x87   :  { %1013 = vmatpush1.bf16.msra.mxu0 %v2106_v11  ;;  %1912 = vmatprep.subr.bf16.mxu1 %v2233_v59  ;;  %v2250_v59 = vld [vmem:[%s3012_s8 + $0x8] sm:$0xff]  }
  0x88   :  { %1014 = vmatprep.subr.bf16.mxu0 %v2114_v12 }
  0x8b   :  { %1015 = vmatpush1.bf16.msra.mxu0 %v2112_v13 }
  0x8c   :  { %1016 = vmatprep.subr.bf16.mxu0 %v2120_v14 }
  0x8f   :  { %1017 = vmatpush1.bf16.msra.mxu0 %v2118_v16 }
  0x90   :  { %1018 = vmatprep.subr.bf16.mxu0 %v2126_v17 }
  0x93   :  { %1019 = vmatpush1.bf16.msra.mxu0 %v2124_v19 }
  0x94   :  { %1020 = vmatprep.subr.bf16.mxu0 %v2132_v20 }
  0x97   :  { %1021 = vmatpush1.bf16.msra.mxu0 %v2130_v21  ;;  %v2234_v21 = vld [vmem:[%s3010_s6] sm:$0xff]  }
  0x98   :  { %1022 = vmatprep.subr.bf16.mxu0 %v2138_v22 }
  0x9b   :  { %1023 = vmatpush1.bf16.msra.mxu0 %v2136_v23  ;;  %v2235_v23 = vld [vmem:[%s3010_s6 + $0x48] sm:$0xff]  }
  0x9c   :  { %1024 = vmatprep.subr.bf16.mxu0 %v2144_v24  ;;  %v2236_v24 = vld [vmem:[%s3010_s6 + $0x8] sm:$0xff]  }
  0x9f   :  { %1025 = vmatpush1.bf16.msra.mxu0 %v2142_v25  ;;  %v2237_v25 = vld [vmem:[%s3010_s6 + $0x50] sm:$0xff]  }
  0xa0   :  { %1026 = vmatprep.subr.bf16.mxu0 %v2150_v26  ;;  %v2238_v26 = vld [vmem:[%s3010_s6 + $0x10] sm:$0xff]  }
  0xa3   :  { %1027 = vmatpush1.bf16.msra.mxu0 %v2148_v27  ;;  %v2239_v27 = vld [vmem:[%s3010_s6 + $0x58] sm:$0xff]  }
  0xa4   :  { %1028 = vmatprep.subr.bf16.mxu0 %v2156_v28  ;;  %v2240_v28 = vld [vmem:[%s3010_s6 + $0x18] sm:$0xff]  }
  0xa7   :  { %1029 = vmatpush1.bf16.msra.mxu0 %v2154_v29  ;;  %v2241_v29 = vld [vmem:[%s3010_s6 + $0x60] sm:$0xff]  }
  0xa8   :  { %1030 = vmatprep.subr.bf16.mxu0 %v2162_v30  ;;  %v2242_v30 = vld [vmem:[%s3010_s6 + $0x20] sm:$0xff]  }
  0xab   :  { %1031 = vmatpush1.bf16.msra.mxu0 %v2160_v31  ;;  %v2243_v31 = vld [vmem:[%s3010_s6 + $0x68] sm:$0xff]  }
  0xac   :  { %1032 = vmatprep.subr.bf16.mxu0 %v2168_v32  ;;  %v2244_v32 = vld [vmem:[%s3010_s6 + $0x28] sm:$0xff]  }
  0xaf   :  { %1033 = vmatpush1.bf16.msra.mxu0 %v2166_v33  ;;  %v2245_v33 = vld [vmem:[%s3010_s6 + $0x70] sm:$0xff]  }
  0xb0   :  { %1034 = vmatprep.subr.bf16.mxu0 %v2174_v34  ;;  %v2246_v34 = vld [vmem:[%s3010_s6 + $0x30] sm:$0xff]  }
  0xb3   :  { %1035 = vmatpush1.bf16.msra.mxu0 %v2172_v35  ;;  %v2247_v35 = vld [vmem:[%s3010_s6 + $0x78] sm:$0xff]  }
  0xb4   :  { %1036 = vmatprep.subr.bf16.mxu0 %v2180_v36  ;;  %v2248_v36 = vld [vmem:[%s3010_s6 + $0x38] sm:$0xff]  }
  0xb7   :  { %1037 = vmatpush1.bf16.msra.mxu0 %v2178_v37  ;;  %v2276_v37 = vmov 0.0  }
  0xb8   :  { %1038 = vmatprep.subr.bf16.mxu0 %v2186_v38  ;;  %v1089_v38 = vld [vmem:[%s3013_s5] sm:$0x3] }
  0xbb   :  { %1039 = vmatpush1.bf16.msra.mxu0 %v2184_v39  ;;  %v1094_v39 = vrot.slane %v1089_v38, %v239_v63  ;;  %v2255_v63 = vld [vmem:[%s3012_s8 + $0x30] sm:$0xff]  }
  0xbc   :  { %1040 = vmatprep.subr.bf16.mxu0 %v2189_v40  ;;  %v1098_v40 = vrot.slane %v1089_v38, %v243_v1 }
  0xbf   :  { %1041 = vmatpush1.bf16.msra.mxu0 %v2187_v41 }
  0xc2   :  { %1043 = vmatmul.mubr.bf16.vlgmr.msra.gmra.mrb[0].mxu0 %v105_v42 }
 0x11e   :  { %v921_v60 = vpop.f32.mrb[0].mxu1 }
 0x11f   :  { %v923_v61 = vpop.f32.mrb[1].mxu1  ;;  %v922_v3 = vadd.f32 %v921_v60, %v240_v2  ;;  %v2251_v60 = vld [vmem:[%s3012_s8 + $0x10] sm:$0xff]   ;;  %v1877_v2 = vld [vmem:[%s3014_s7] ss:$0 sm:$0xff] }
 0x120   :  { %v925_v62 = vpop.f32.mrb[2].mxu1  ;;  %v924_v4 = vadd.f32 %v923_v61, %v244_v18  ;;  %v2252_v61 = vld [vmem:[%s3012_s8 + $0x18] sm:$0xff]  }
 0x121   :  { %v926_v47 = vpop.f32.mrb[3].mxu1  ;;  %v2253_v62 = vld [vmem:[%s3012_s8 + $0x20] sm:$0xff]  }
 0x122   :  { %v2254_v47 = vld [vmem:[%s3012_s8 + $0x28] sm:$0xff]  }
 0x195   :  { %v1044_v5 = vpop.f32.mrb[0].mxu0 }
 0x196   :  { %v1981_v6 = vadd.f32 %v1044_v5, %v922_v3  ;;  %v1046_v7 = vpop.f32.mrb[1].mxu0 }
 0x197   :  { %v1983_v8 = vadd.f32 %v1046_v7, %v924_v4  ;;  %v1048_v9 = vpop.f32.mrb[2].mxu0 }
 0x198   :  { %v1051_v10 = vmul.f32 0.5, %v1981_v6  ;;  %v1049_v52 = vpop.f32.mrb[3].mxu0 }
 0x199   :  { %v1052_v11 = vmul.f32 0.5, %v1983_v8 }
 0x19a   :  { %2261 = vtanh.f32 %v1051_v10 }
 0x19b   :  { %2263 = vtanh.f32 %v1052_v11  ;;  %v2257_v11 = vld [vmem:[%s3015_s10] sm:$0xff]  }
 0x1a4   :  { %v2262_v12 = vpop.eup %2261 }
 0x1a5   :  { %v2264_v13 = vpop.eup %2263  ;;  %v1055_v14 = vadd.f32 1.0, %v2262_v12  ;;  %v2258_v12 = vld [vmem:[%s3015_s10 + $0x8] sm:$0xff]  }
 0x1a6   :  { %v1056_v16 = vadd.f32 1.0, %v2264_v13  ;;  %v2259_v13 = vld [vmem:[%s3015_s10 + $0x10] sm:$0xff]  }
 0x1a7   :  { %v1057_v17 = vmul.f32 0.5, %v1055_v14  ;;  %v2260_v14 = vld [vmem:[%s3015_s10 + $0x18] sm:$0xff]  }
 0x1a8   :  { %v1058_v19 = vmul.f32 0.5, %v1056_v16  ;;  %v2278_v16 = vmov 0  }
 0x1a9   :  { %v1059_v22 = vpack.c.bf16 %v1057_v17, %v1057_v17  ;;  %1996 = vset.pattern.permute.xlu0 %v2278_v16  ;;  %v1591_v17 = vld [vmem:[%s3016_s1] sm:$0x3] }
 0x1aa   :  { %v1060_v20 = vpack.c.bf16 %v1058_v19, %v1058_v19  ;;  %1604 = vperm.xlu0 %1996, %v1591_v17   ;;  %v1894_v19 = vld [vmem:[%s3017_s9] ss:$0 sm:$0xff] }
 0x1ac   :  { %1876 = vmatprep.mubr.msk.bf16.mxu1 %vm1241_vm0, %v1060_v20 }
 0x1ad   :  { %1278 = vmatmul.mubr.bf16.vlgmr.msra.gmra.mrb[4].mxu1 %v1059_v22 }
 0x1ae   :  { %1913 = vmatpush3.bf16.msra.mxu1 %v2234_v21 }
 0x1af   :  { %1914 = vmatprep.subr.bf16.mxu1 %v2235_v23 }
 0x1b2   :  { %1915 = vmatpush3.bf16.msra.mxu1 %v2236_v24 }
 0x1b3   :  { %1916 = vmatprep.subr.bf16.mxu1 %v2237_v25 }
 0x1b6   :  { %1917 = vmatpush3.bf16.msra.mxu1 %v2238_v26 }
 0x1b7   :  { %1918 = vmatprep.subr.bf16.mxu1 %v2239_v27 }
 0x1ba   :  { %1919 = vmatpush3.bf16.msra.mxu1 %v2240_v28 }
 0x1bb   :  { %1920 = vmatprep.subr.bf16.mxu1 %v2241_v29 }
 0x1be   :  { %1921 = vmatpush3.bf16.msra.mxu1 %v2242_v30  ;;  %v20_v30 = vstv %s3018_s14 }
 0x1bf   :  { %1922 = vmatprep.subr.bf16.mxu1 %v2243_v31  ;;  %21 = vst [vmem:[#allocation2] sm:$0x1] %v20_v30  ;;  %v1903_v31 = vld [vmem:[%s3019_s11] ss:$0 sm:$0xff] }
 0x1c2   :  { %1923 = vmatpush3.bf16.msra.mxu1 %v2244_v32 }
 0x1c3   :  { %1924 = vmatprep.subr.bf16.mxu1 %v2245_v33 }
 0x1c6   :  { %1925 = vmatpush3.bf16.msra.mxu1 %v2246_v34 }
 0x1c7   :  { %1926 = vmatprep.subr.bf16.mxu1 %v2247_v35  ;;  %v1909_v35 = vld [vmem:[%s3020_s12] ss:$0 sm:$0xff] }
 0x1ca   :  { %1927 = vmatpush3.bf16.msra.mxu1 %v2248_v36 }
 0x1cb   :  { %1948 = vmatprep.subr.bf16.mxu1 %v2276_v37 }
 0x229   :  { %v1605_v32 = vpop.permute.xlu0 %1604 }
 0x22a   :  { %v1613_v33 = vmul.f32 %v1903_v31, %v1605_v32 }
 0x280   :  { %v1279_v41 = vpop.f32.mrb[4].mxu1 }
 0x281   :  { %v1280_v42 = vadd.f32 %v1279_v41, %v1094_v39  ;;  %v1281_v43 = vpop.f32.mrb[5].mxu1 }
 0x282   :  { %v1282_v44 = vadd.f32 %v1281_v43, %v1098_v40  ;;  %v1283_v45 = vpop.f32.mrb[6].mxu1 }
 0x283   :  { %v1286_v46 = vmul.f32 0.5, %v1280_v42  ;;  %v1284_v48 = vpop.f32.mrb[7].mxu1 }
 0x284   :  { %v1287_v49 = vmul.f32 0.5, %v1282_v44  ;;  %v1910_v44 = vld [vmem:[%s3021_s13] ss:$0 sm:$0xff] }
 0x285   :  { %2265 = vtanh.f32 %v1286_v46 }
 0x286   :  { %2267 = vtanh.f32 %v1287_v49  ;;  %v1911_v49 = vld [vmem:[#allocation2] ss:$0 sm:$0xff] }
 0x28f   :  { %v2266_v50 = vpop.eup %2265 }
 0x290   :  { %v2268_v51 = vpop.eup %2267  ;;  %v1290_v53 = vadd.f32 1.0, %v2266_v50 }
 0x291   :  { %v1291_v54 = vadd.f32 1.0, %v2268_v51 }
 0x292   :  { %v1292_v55 = vmul.f32 0.5, %v1290_v53 }
 0x293   :  { %v1293_v56 = vmul.f32 0.5, %v1291_v54 }
 0x294   :  { %v1294_v58 = vpack.c.bf16 %v1292_v55, %v1292_v55 }
 0x295   :  { %v1295_v57 = vpack.c.bf16 %v1293_v56, %v1293_v56 }
 0x297   :  { %1463 = vmatprep.mubr.bf16.mxu1 %v1295_v57 }
 0x298   :  { %1464 = vmatmul.mubr.bf16.vlgmr.msra.gmra.mrb[8].mxu1 %v1294_v58 }
 0x299   :  { %1949 = vmatpush3.bf16.msra.mxu1 %v2249_v15  ;;  %1964 = vmatprep.mubr.msk.bf16.mxu1 %vm2277_vm1, %v2276_v37 }
 0x29a   :  { %1950 = vmatprep.subr.bf16.mxu1 %v2276_v37 }
 0x29d   :  { %1951 = vmatpush3.bf16.msra.mxu1 %v2250_v59 }
 0x29e   :  { %1952 = vmatprep.subr.bf16.mxu1 %v2276_v37 }
 0x2a1   :  { %1953 = vmatpush3.bf16.msra.mxu1 %v2251_v60 }
 0x2a2   :  { %1954 = vmatprep.subr.bf16.mxu1 %v2276_v37 }
 0x2a5   :  { %1955 = vmatpush3.bf16.msra.mxu1 %v2252_v61 }
 0x2a6   :  { %1956 = vmatprep.subr.bf16.mxu1 %v2276_v37 }
 0x2a9   :  { %1957 = vmatpush3.bf16.msra.mxu1 %v2253_v62 }
 0x2aa   :  { %1958 = vmatprep.subr.bf16.mxu1 %v2276_v37 }
 0x2ad   :  { %1959 = vmatpush3.bf16.msra.mxu1 %v2254_v47 }
 0x2ae   :  { %1960 = vmatprep.subr.bf16.mxu1 %v2276_v37 }
 0x2b1   :  { %1961 = vmatpush3.bf16.msra.mxu1 %v2255_v63 }
 0x2b2   :  { %1962 = vmatprep.subr.bf16.mxu1 %v2276_v37 }
 0x2b5   :  { %1963 = vmatpush3.bf16.msra.mxu1 %v2256_v0 }
 0x2b6   :  { %1968 = vmatprep.subr.bf16.mxu1 %v2276_v37 }
 0x36b   :  { %v1928_v1 = vpop.f32.mrb[8].mxu1 }
 0x36c   :  { %v1929_v18 = vpop.f32.mrb[9].mxu1 }
 0x36d   :  { %v1930_v3 = vadd.f32 %v1929_v18, %v1928_v1  ;;  %v1931_v4 = vpop.f32.mrb[10].mxu1 }
 0x36e   :  { %v1932_v5 = vpop.f32.mrb[11].mxu1 }
 0x36f   :  { %v1466_v6 = vadd.f32 %v1930_v3, %v1877_v2 }
 0x371   :  { %v1471_v7 = vmul.f32 0.5, %v1466_v6 }
 0x373   :  { %2269 = vtanh.f32 %v1471_v7 }
 0x37d   :  { %v2270_v8 = vpop.eup %2269 }
 0x37e   :  { %v1473_v9 = vadd.f32 1.0, %v2270_v8 }
 0x380   :  { %v1474_v10 = vmul.f32 0.5, %v1473_v9 }
 0x382   :  { %v1475_v52 = vpack.c.bf16 %v1474_v10, %v1474_v10 }
 0x384   :  { %1965 = vmatmul.mubr.bf16.vlgmr.msra.gmra.mrb[12].mxu1 %v1475_v52 }
 0x385   :  { %1976 = vmatprep.mubr.msk.bf16.mxu1 %vm2277_vm1, %v2276_v37  ;;  %1969 = vmatpush3.bf16.msra.mxu1 %v2257_v11 }
 0x386   :  { %1970 = vmatprep.subr.bf16.mxu1 %v2276_v37 }
 0x389   :  { %1971 = vmatpush3.bf16.msra.mxu1 %v2258_v12 }
 0x38a   :  { %1972 = vmatprep.subr.bf16.mxu1 %v2276_v37 }
 0x38d   :  { %1973 = vmatpush3.bf16.msra.mxu1 %v2259_v13 }
 0x38e   :  { %1974 = vmatprep.subr.bf16.mxu1 %v2276_v37 }
 0x391   :  { %1975 = vmatpush3.bf16.msra.mxu1 %v2260_v14 }
 0x457   :  { %v1581_v20 = vpop.f32.mrb[12].mxu1 }
 0x458   :  { %v1582_v21 = vadd.f32 %v1894_v19, %v1581_v20  ;;  %v1966_v22 = vpop.f32.mrb[13].mxu1 }
 0x459   :  { %v1584_v23 = vpop.f32.mrb[14].mxu1 }
 0x45a   :  { %v1587_v24 = vmul.f32 0.5, %v1582_v21  ;;  %v1967_v25 = vpop.f32.mrb[15].mxu1 }
 0x45c   :  { %2271 = vtanh.f32 %v1587_v24 }
 0x466   :  { %v2272_v26 = vpop.eup %2271 }
 0x467   :  { %v1589_v27 = vadd.f32 1.0, %v2272_v26 }
 0x469   :  { %v1590_v28 = vmul.f32 0.5, %v1589_v27 }
 0x46b   :  { %v1592_v29 = vpack.c.bf16 %v1590_v28, %v1590_v28 }
 0x46d   :  { %1977 = vmatmul.mubr.msk.bf16.vlgmr.msra.gmra.mrb[16].mxu1 %vm1638_vm2, %v1592_v29 }
 0x540   :  { %v1676_v34 = vpop.f32.mrb[16].mxu1 }
 0x541   :  { %v1677_v36 = vadd.f32 %v1676_v34, %v1613_v33  ;;  %v1978_v37 = vpop.f32.mrb[17].mxu1 }
 0x542   :  { %v1679_v38 = vpop.f32.mrb[18].mxu1 }
 0x543   :  { %v1689_v39 = vadd.f32 %v1909_v35, %v1677_v36  ;;  %v1979_v40 = vpop.f32.mrb[19].mxu1 }
 0x545   :  { %v1690_v41 = vmul.f32 0.5, %v1689_v39 }
 0x547   :  { %2273 = vtanh.f32 %v1690_v41 }
 0x551   :  { %v2274_v42 = vpop.eup %2273 }
 0x552   :  { %v1692_v43 = vadd.f32 1.0, %v2274_v42 }
 0x554   :  { %v1693_v45 = vmul.f32 0.5, %v1692_v43 }
 0x556   :  { %v1701_v46 = vmul.f32 %v1910_v44, %v1693_v45 }
 0x558   :  { %v1703_v48 = vsel %vm1702_vm3, %v1701_v46, 0.0 }
 0x559   :  { %1704 = vadd.xlane.f32.xlu0 %v1703_v48 }
 0x5e6   :  { %v1705_v50 = vpop.xlane.xlu0 %1704 }
 0x5e7   :  { %v1713_v51 = vadd.f32 %v1911_v49, %v1705_v50 }
 0x5e9   :  { %1715 = vst.msk [vmem:[%s3022_s15] sm:$0x3] %vm1714_vm4, %v1713_v51 }

</bundles_post_ra>
